<compile_context>
chip_gen: v7x
topology: tpu7x:2x2x1
jax: 0.10.0
libtpu: 0.0.40
codegen_flags: <defaults>
</compile_context>

<pallas_src>
import functools
import math

import jax
import jax.numpy as jnp
from jax.experimental import pallas as pl
from jax.experimental.pallas import tpu as pltpu


# ------------------------------------------------------------------ helpers ---

def _round_up(x, m):
    return (x + m - 1) // m * m


def _row_tiling(n, max_tile):
    """Return (tile, padded_n, num_tiles) for tiling a row dimension."""
    if n <= max_tile:
        return n, n, 1                      # full block (no divisibility needed)
    tile = max_tile                          # multiple of 8
    n_pad = _round_up(n, tile)
    return tile, n_pad, n_pad // tile


# ------------------------------------------------------------------ kernels ---

def _linear_kernel(x_ref, w_ref, b_ref, o_ref, *, act):
    x = x_ref[...]
    if act == "gelu_in":
        # TODO(synk): torch's HGTConv uses exact (erf) GELU; tanh approximation
        # is used here for Mosaic-friendly lowering.
        x = jax.nn.gelu(x, approximate=True)
    y = jnp.dot(x, w_ref[...], preferred_element_type=jnp.float32) + b_ref[...]
    if act == "relu":
        y = jnp.maximum(y, 0.0)
    o_ref[...] = y


def pallas_linear(x, w, b, act="none", row_tile=256):
    """y = act_out( act_in(x) @ w + b ), tiled over rows."""
    n, f_in = x.shape
    f_out = w.shape[1]
    tm, n_pad, n_tiles = _row_tiling(n, row_tile)
    xp = x if n_pad == n else jnp.pad(x, ((0, n_pad - n), (0, 0)))
    b2 = b.reshape(1, f_out)
    out = pl.pallas_call(
        functools.partial(_linear_kernel, act=act),
        out_shape=jax.ShapeDtypeStruct((n_pad, f_out), jnp.float32),
        grid=(n_tiles,),
        in_specs=[
            pl.BlockSpec((tm, f_in), lambda i: (i, 0)),
            pl.BlockSpec((f_in, f_out), lambda i: (0, 0)),
            pl.BlockSpec((1, f_out), lambda i: (0, 0)),
        ],
        out_specs=pl.BlockSpec((tm, f_out), lambda i: (i, 0)),
        compiler_params=pltpu.CompilerParams(dimension_semantics=("parallel",)),
    )(xp, w, b2)
    return out[:n] if n_pad != n else out


def _hgt_attn_kernel(q_ref, k_ref, v_ref, bias_ref, deg_ref, o_ref):
    q = q_ref[...]            # (H, TM, D)   scale & p_rel already folded into K
    k = k_ref[...]            # (H, S, D)
    v = v_ref[...]            # (H, S, D)
    bias = bias_ref[...]      # (TM, S)  additive: 0 on edges, -1e30 elsewhere
    deg = deg_ref[...]        # (TM, 1)  number of incoming edges per dst row

    s = jnp.einsum('hnd,hsd->hns', q, k, preferred_element_type=jnp.float32)
    s = s + bias[None, :, :]
    row_max = jnp.max(s, axis=-1, keepdims=True)
    e = jnp.exp(s - row_max)                      # masked entries underflow to 0
    denom = jnp.sum(e, axis=-1, keepdims=True)    # >= 1 whenever a row has edges
    attn = e * pl.reciprocal(denom, approx=True)
    out = jnp.einsum('hns,hsd->hnd', attn, v, preferred_element_type=jnp.float32)
    # destination nodes with no incoming edges aggregate to zero (sum aggr)
    o_ref[...] = jnp.where(deg[None, :, :] > 0.0, out, 0.0)


def pallas_hgt_attention(q, k, v, bias, deg, row_tile=128):
    """All-heads HGT attention.  q:(H,N,D)  k,v:(H,S,D)  bias:(N,S)  deg:(N,1)."""
    # TODO(synk): for large graphs, also tile the source dimension with an
    # online-softmax accumulator and size tiles for v7x's 64 MiB VMEM.
    H, n, d = q.shape
    s_tot = k.shape[1]
    tm, n_pad, n_tiles = _row_tiling(n, row_tile)
    if n_pad != n:
        pad = n_pad - n
        q = jnp.pad(q, ((0, 0), (0, pad), (0, 0)))
        bias = jnp.pad(bias, ((0, pad), (0, 0)))
        deg = jnp.pad(deg, ((0, pad), (0, 0)))
    out = pl.pallas_call(
        _hgt_attn_kernel,
        out_shape=jax.ShapeDtypeStruct((H, n_pad, d), jnp.float32),
        grid=(n_tiles,),
        in_specs=[
            pl.BlockSpec((H, tm, d), lambda i: (0, i, 0)),
            pl.BlockSpec((H, s_tot, d), lambda i: (0, 0, 0)),
            pl.BlockSpec((H, s_tot, d), lambda i: (0, 0, 0)),
            pl.BlockSpec((tm, s_tot), lambda i: (i, 0)),
            pl.BlockSpec((tm, 1), lambda i: (i, 0)),
        ],
        out_specs=pl.BlockSpec((H, tm, d), lambda i: (0, i, 0)),
        compiler_params=pltpu.CompilerParams(dimension_semantics=("parallel",)),
    )(q, k, v, bias, deg)
    return out[:, :n, :] if n_pad != n else out


def _bilin_kernel(xi_ref, xj_ref, w_ref, o_ref):
    prod = jnp.dot(xi_ref[...], w_ref[...],
                   preferred_element_type=jnp.float32) * xj_ref[...]   # (E, D)
    ones = jnp.ones((1, prod.shape[1]), jnp.float32)
    # Lane-major (1, E) result; reduction over D done on the MXU (no (E,1) store).
    o_ref[...] = jax.lax.dot_general(ones, prod, (((1,), (1,)), ((), ())),
                                     preferred_element_type=jnp.float32)


def pallas_bilinear_score(xi, xj, w):
    """s[e] = sum_d ( (xi @ w)[e, d] * xj[e, d] )  (torch: sum(bilin(x_i)*x_j, -1))"""
    e, d = xi.shape
    out = pl.pallas_call(
        _bilin_kernel,
        out_shape=jax.ShapeDtypeStruct((1, e), jnp.float32),
        grid=(1,),
        in_specs=[
            pl.BlockSpec((e, d), lambda i: (0, 0)),
            pl.BlockSpec((e, d), lambda i: (0, 0)),
            pl.BlockSpec((d, d), lambda i: (0, 0)),
        ],
        out_specs=pl.BlockSpec((1, e), lambda i: (0, 0)),
        compiler_params=pltpu.CompilerParams(dimension_semantics=("arbitrary",)),
    )(xi, xj, w)
    return out[0]


# -------------------------------------------------------------- model logic ---

def _compose_rel_weights(W, b, rel, head_scale, H, D):
    """Fold the per-head relation transform (and optional per-head scale) into
    the projection weight/bias:  x @ W_eff + b_eff == ((x @ W + b)_h @ rel_h) * s_h."""
    c_in, c_out = W.shape
    W_eff = jnp.einsum('chd,hde->che', W.reshape(c_in, H, D), rel)
    W_eff = W_eff * head_scale[None, :, None]
    b_eff = jnp.einsum('hd,hde->he', b.reshape(H, D), rel) * head_scale[:, None]
    return W_eff.reshape(c_in, c_out), b_eff.reshape(c_out)


def hgt_conv_forward(lp, x_dict, edge_index_dict, node_types, edge_types, num_heads):
    """One HGTConv layer (PyG 2.x semantics: softmax over all incoming edges of a
    destination node across relation types, sum aggregation, GELU + out_lin +
    sigmoid-gated skip connection)."""
    H = num_heads
    c_out = lp["out_channels"]
    D = c_out // H
    scale = 1.0 / math.sqrt(D)

    # Q projection: a single matmul per destination node type.
    q_dict = {}
    for nt in node_types:
        p = lp["kqv"][nt]
        q_dict[nt] = pallas_linear(x_dict[nt], p["Wq"], p["bq"])

    new_x = {}
    for nt in node_types:
        x_old = x_dict[nt]
        n_dst = x_old.shape[0]
        in_ets = [et for et in edge_types if et[2] == nt and et in edge_index_dict]
        if not in_ets:
            new_x[nt] = x_old
            continue

        sizes = [int(x_dict[et[0]].shape[0]) for et in in_ets]
        s_tot = int(sum(sizes))

        # Additive log-mask bias over the concatenated per-relation source
        # blocks, built once per destination type and reused by all heads.
        mask = jnp.zeros((n_dst, s_tot), jnp.float32)
        off = 0
        for et, sz in zip(in_ets, sizes):
            ei = edge_index_dict[et]  # (2, E): row0 = src idx, row1 = dst idx
            mask = mask.at[ei[1], off + ei[0]].set(1.0)
            off += sz
        # TODO(synk): duplicate (src,dst) pairs collapse to a single edge under
        # the dense mask; PyG's edge-level softmax would count each duplicate.
        bias = (mask - 1.0) * 1e30           # 0 on edges, -1e30 elsewhere
        deg = jnp.sum(mask, axis=1, keepdims=True)

        # Fused, relation-composed K/V: ONE (c_in, 2*c_out) matmul per relation.
        k_blocks, v_blocks = [], []
        for et in in_ets:
            src_t = et[0]
            p = lp["kqv"][src_t]
            k_scale = lp["p_rel"][et] * scale                 # (H,)  p_rel & 1/sqrt(D)
            Wk_eff, bk_eff = _compose_rel_weights(p["Wk"], p["bk"],
                                                  lp["k_rel"][et], k_scale, H, D)
            Wv_eff, bv_eff = _compose_rel_weights(p["Wv"], p["bv"],
                                                  lp["v_rel"][et],
                                                  jnp.ones((H,), jnp.float32), H, D)
            W_kv = jnp.concatenate([Wk_eff, Wv_eff], axis=1)  # (c_in, 2*c_out)
            b_kv = jnp.concatenate([bk_eff, bv_eff], axis=0)
            kv = pallas_linear(x_dict[src_t], W_kv, b_kv)      # (N_src, 2*c_out)
            k_blocks.append(kv[:, :c_out])
            v_blocks.append(kv[:, c_out:])
        k_cat = jnp.concatenate(k_blocks, axis=0)              # (S_tot, c_out)
        v_cat = jnp.concatenate(v_blocks, axis=0)

        q_h = q_dict[nt].reshape(n_dst, H, D).transpose(1, 0, 2)   # (H, N, D)
        k_h = k_cat.reshape(s_tot, H, D).transpose(1, 0, 2)        # (H, S, D)
        v_h = v_cat.reshape(s_tot, H, D).transpose(1, 0, 2)

        out_h = pallas_hgt_attention(q_h, k_h, v_h, bias, deg)     # (H, N, D)
        msg = out_h.transpose(1, 0, 2).reshape(n_dst, c_out)

        a = pallas_linear(msg, lp["out_lin"][nt]["W"], lp["out_lin"][nt]["b"],
                          act="gelu_in")
        if a.shape[-1] == x_old.shape[-1]:
            alpha = jax.nn.sigmoid(lp["skip"][nt])
            a = alpha * a + (1.0 - alpha) * x_old
        new_x[nt] = a
    return new_x


def hgt_forward(params, x_dict, edge_index_dict, node_types, edge_types, num_heads):
    x = {}
    for nt in node_types:
        p = params["lin_dict"][nt]
        x[nt] = pallas_linear(x_dict[nt], p["W"], p["b"], act="relu")
    for lp in params["convs"]:
        x = hgt_conv_forward(lp, x, edge_index_dict, node_types, edge_types, num_heads)
    return x["miRNA"], x["gene"]


def hgtmt_forward(params, x_dict, edge_index_dict, label_edge,
                  node_types, edge_types, num_heads):
    xm, xg = hgt_forward(params, x_dict, edge_index_dict,
                         node_types, edge_types, num_heads)
    xi = xm[label_edge[0]]   # gather (glue)
    xj = xg[label_edge[1]]
    return pallas_bilinear_score(xi, xj, params["bilin_W"])


# ------------------------------------------------------------- param init ---

def init_params(key, node_types, edge_types, in_dims, hidden_channels, num_heads):
    keys = iter(jax.random.split(key, 4096))

    def dense(fan_in, fan_out):
        scale = 1.0 / math.sqrt(fan_in)
        return jax.random.normal(next(keys), (fan_in, fan_out), jnp.float32) * scale

    params = {"lin_dict": {}, "convs": []}
    for nt in node_types:
        params["lin_dict"][nt] = {
            "W": dense(in_dims[nt], hidden_channels[0]),
            "b": jnp.zeros((hidden_channels[0],), jnp.float32),
        }

    num_layers = len(hidden_channels) - 1
    H = num_heads
    for i in range(num_layers):
        c_in, c_out = hidden_channels[i], hidden_channels[i + 1]
        D = c_out // H
        lp = {"out_channels": c_out, "kqv": {}, "k_rel": {}, "v_rel": {},
              "p_rel": {}, "out_lin": {}, "skip": {}}
        for nt in node_types:
            lp["kqv"][nt] = {
                "Wk": dense(c_in, c_out), "bk": jnp.zeros((c_out,), jnp.float32),
                "Wq": dense(c_in, c_out), "bq": jnp.zeros((c_out,), jnp.float32),
                "Wv": dense(c_in, c_out), "bv": jnp.zeros((c_out,), jnp.float32),
            }
            lp["out_lin"][nt] = {"W": dense(c_out, c_out),
                                 "b": jnp.zeros((c_out,), jnp.float32)}
            lp["skip"][nt] = jnp.float32(1.0)
        for et in edge_types:
            lp["k_rel"][et] = (jax.random.normal(next(keys), (H, D, D), jnp.float32)
                               / math.sqrt(D))
            lp["v_rel"][et] = (jax.random.normal(next(keys), (H, D, D), jnp.float32)
                               / math.sqrt(D))
            lp["p_rel"][et] = jnp.ones((H,), jnp.float32)
        params["convs"].append(lp)

    params["bilin_W"] = dense(hidden_channels[-1], hidden_channels[-1])
    return params


# --------------------------------------------------------------------- main ---

if __name__ == "__main__":
    node_types = ("miRNA", "gene")
    edge_types = (("miRNA", "to", "gene"), ("gene", "rev_to", "miRNA"))
    hidden_channels = [32, 32, 32]   # num_layers = 2
    out_channels = 32                # must equal hidden_channels[-1] for the bilinear head
    num_heads = 2

    n_mirna, n_gene = 10, 12
    f_mirna, f_gene = 16, 24
    n_edges_mg, n_edges_gm, n_label = 20, 18, 8

    key = jax.random.PRNGKey(0)
    ks = jax.random.split(key, 10)

    x_dict = {
        "miRNA": jax.random.normal(ks[0], (n_mirna, f_mirna), jnp.float32),
        "gene": jax.random.normal(ks[1], (n_gene, f_gene), jnp.float32),
    }
    edge_index_dict = {
        edge_types[0]: jnp.stack([
            jax.random.randint(ks[2], (n_edges_mg,), 0, n_mirna, dtype=jnp.int32),
            jax.random.randint(ks[3], (n_edges_mg,), 0, n_gene, dtype=jnp.int32),
        ]),
        edge_types[1]: jnp.stack([
            jax.random.randint(ks[4], (n_edges_gm,), 0, n_gene, dtype=jnp.int32),
            jax.random.randint(ks[5], (n_edges_gm,), 0, n_mirna, dtype=jnp.int32),
        ]),
    }
    label_edge = jnp.stack([
        jax.random.randint(ks[6], (n_label,), 0, n_mirna, dtype=jnp.int32),
        jax.random.randint(ks[7], (n_label,), 0, n_gene, dtype=jnp.int32),
    ])

    params = init_params(jax.random.PRNGKey(42), node_types, edge_types,
                         {"miRNA": f_mirna, "gene": f_gene},
                         hidden_channels, num_heads)

    scores = hgtmt_forward(params, dict(x_dict), edge_index_dict, label_edge,
                           node_types, edge_types, num_heads)
    scores = jax.block_until_ready(scores)
    assert scores.shape == (n_label,)
    assert bool(jnp.all(jnp.isfinite(scores)))
    print("KERNEL_OK")
</pallas_src>

<mosaic_0001>
module attributes {stable_mosaic.version = 11 : i64} {
  func.func @_linear_kernel(%arg0: i32, %arg1: memref<10x16xf32, #tpu.memory_space<vmem>>, %arg2: memref<16x32xf32, #tpu.memory_space<vmem>>, %arg3: memref<1x32xf32, #tpu.memory_space<vmem>>, %arg4: memref<10x32xf32, #tpu.memory_space<vmem>>) attributes {dimension_semantics = [#tpu.dimension_semantics<parallel>], iteration_bounds = array<i64: 1>, scalar_prefetch = 0 : i64, scratch_operands = 0 : i64, tpu.core_type = #tpu.core_type<tc>, window_params = [{transform_indices = @transform_0, window_bounds = array<i64: 10, 16>}, {pipeline_mode = #tpu.pipeline_mode<synchronous>, transform_indices = @transform_1, window_bounds = array<i64: 16, 32>}, {pipeline_mode = #tpu.pipeline_mode<synchronous>, transform_indices = @transform_2, window_bounds = array<i64: 1, 32>}, {transform_indices = @transform_3, window_bounds = array<i64: 10, 32>}]} {
    %c0 = arith.constant 0 : index
    %c0_0 = arith.constant 0 : index
    %0 = vector.load %arg1[%c0, %c0_0] : memref<10x16xf32, #tpu.memory_space<vmem>>, vector<10x16xf32>
    %c0_1 = arith.constant 0 : index
    %c0_2 = arith.constant 0 : index
    %1 = vector.load %arg2[%c0_1, %c0_2] : memref<16x32xf32, #tpu.memory_space<vmem>>, vector<16x32xf32>
    %cst = arith.constant dense<0.000000e+00> : vector<10x32xf32>
    %2 = tpu.matmul %0, %1, %cst {dimension_numbers = #tpu.dot_dimension_numbers<[1], [0], [0], [1], [0, 0, 1, 1], [], []>} : vector<10x16xf32>, vector<16x32xf32>, vector<10x32xf32> -> vector<10x32xf32>
    %c0_3 = arith.constant 0 : index
    %c0_4 = arith.constant 0 : index
    %3 = vector.load %arg3[%c0_3, %c0_4] : memref<1x32xf32, #tpu.memory_space<vmem>>, vector<1x32xf32>
    %4 = vector.broadcast %3 : vector<1x32xf32> to vector<10x32xf32>
    %5 = arith.addf %2, %4 : vector<10x32xf32>
    %cst_5 = arith.constant 0.000000e+00 : f32
    %6 = vector.broadcast %cst_5 : f32 to vector<10x32xf32>
    %7 = arith.maximumf %5, %6 : vector<10x32xf32>
    %c0_6 = arith.constant 0 : index
    %c0_7 = arith.constant 0 : index
    %8 = vector.load %arg4[%c0_6, %c0_7] : memref<10x32xf32, #tpu.memory_space<vmem>>, vector<10x32xf32>
    tpu.vector_store %arg4[%c0_6, %c0_7], %7 {strides = array<i32>} : memref<10x32xf32, #tpu.memory_space<vmem>>, vector<10x32xf32>,
    return
  }
  func.func @transform_0(%arg0: i32) -> (i32, i32) {
    %c0_i32 = arith.constant 0 : i32
    %c0_i32_0 = arith.constant 0 : i32
    return %arg0, %c0_i32 : i32, i32
  }
  func.func @transform_1(%arg0: i32) -> (i32, i32) {
    %c0_i32 = arith.constant 0 : i32
    %c0_i32_0 = arith.constant 0 : i32
    %c0_i32_1 = arith.constant 0 : i32
    return %c0_i32, %c0_i32_0 : i32, i32
  }
  func.func @transform_2(%arg0: i32) -> (i32, i32) {
    %c0_i32 = arith.constant 0 : i32
    %c0_i32_0 = arith.constant 0 : i32
    %c0_i32_1 = arith.constant 0 : i32
    return %c0_i32, %c0_i32_0 : i32, i32
  }
  func.func @transform_3(%arg0: i32) -> (i32, i32) {
    %c0_i32 = arith.constant 0 : i32
    %c0_i32_0 = arith.constant 0 : i32
    return %arg0, %c0_i32 : i32, i32
  }
}

</mosaic_0001>

<bundles_post_ra>
// kernel: tpu_custom_call.1
= control target key start
LH: loop header
LB: loop body
LE: loop exit
PB: predicated region body
PF: predicated region fallthrough
CT: control target
= control target key end

     0   :  { %8 = vsyncpa [#allocation3], 0  ;;  %s328_s0 = inlined_call_operand.hbm [shape: f32[10,16], index: 0, kind: input, shape index: {}]   ;;  %s329_s1 = inlined_call_operand.hbm [shape: f32[16,32], index: 1, kind: input, shape index: {}]   ;;  %s330_s2 = inlined_call_operand.vmem [shape: f32[1,32], index: 2, kind: input, shape index: {}]   ;;  %s331_s3 = inlined_call_operand.hbm [shape: f32[10,32], index: 3, kind: output, shape index: {}]  }
   0x1   :  { %9 = vsyncpa [#allocation6], 0 }
   0x2   :  { %10 = vsyncpa [#allocation4], 0  ;;  %s255_s12 = smov [#allocation2]   ;;  %s183_s16 = scalar_lea.hbm %s328_s0, 256 }
   0x3   :  { %s16_s13 = sshll.u32 %s255_s12, 4  ;;  %p184_p0 = scmp.ne.s32.totalorder %s328_s0, %s183_s16  ;;  %s17_s13 = int_to_ptr.vmem [resolvable:$true] %s16_s13 }
   0x4   :  { %p187_p1 = scmp.lt.u32.totalorder %s183_s16, %s328_s0 }
   0x6   :  { %p189_p2 = pnand %p187_p1, %p184_p0 }
   0x8   :  { %192 = shalt.err (!%p189_p2)
}
   0x9   :  { %s193_s21 = scalar_lea.vmem %s17_s13, 256  ;;  %p198_p4 = scmp.lt.s32.totalorder %s17_s13, %s17_s13 }
   0xa   :  { %p194_p3 = scmp.ne.s32.totalorder %s17_s13, %s193_s21  ;;  %p199_p5 = scmp.lt.s32.totalorder %s193_s21, %s193_s21 }
   0xc   :  { %p200_p6 = por %p199_p5, %p198_p4 }
   0xe   :  { %p201_p7 = pnand %p200_p6, %p194_p3 }
  0x10   :  { %204 = shalt.err (!%p201_p7)
}
  0x11   :  { %s256_s22 = smov 128   ;;  %s257_s23 = smov 8  }
  0x12   :  { %22 = dma.hbm_to_vmem [thread:$0]  %s328_s0, 256, %s17_s13, [#allocation3], %s256_s22, %s256_s22, %s257_s23  }
  0x13   :  { %s258_s26 = smov [#allocation5]   ;;  %s205_s30 = scalar_lea.hbm %s329_s1, 256 }
  0x14   :  { %s28_s27 = sshll.u32 %s258_s26, 4  ;;  %p206_p8 = scmp.ne.s32.totalorder %s329_s1, %s205_s30  ;;  %s29_s27 = int_to_ptr.vmem [resolvable:$true] %s28_s27 }
  0x15   :  { %p209_p9 = scmp.lt.u32.totalorder %s205_s30, %s329_s1 }
  0x17   :  { %p211_p10 = pnand %p209_p9, %p206_p8 }
  0x19   :  { %214 = shalt.err (!%p211_p10)
}
  0x1a   :  { %s215_s8 = scalar_lea.vmem %s29_s27, 256  ;;  %p220_p12 = scmp.lt.s32.totalorder %s29_s27, %s29_s27 }
  0x1b   :  { %p216_p11 = scmp.ne.s32.totalorder %s29_s27, %s215_s8  ;;  %p221_p13 = scmp.lt.s32.totalorder %s215_s8, %s215_s8 }
  0x1d   :  { %p222_p0 = por %p221_p13, %p220_p12 }
  0x1f   :  { %p223_p1 = pnand %p222_p0, %p216_p11 }
  0x21   :  { %226 = shalt.err (!%p223_p1)
}
  0x22   :  { %34 = dma.hbm_to_vmem [thread:$0]  %s329_s1, 256, %s29_s27, [#allocation6], %s256_s22, %s256_s22, %s257_s23  }
  0x23   :  { %249 = dma.done.wait [#allocation3], 256  }
  0x24   :  { %250 = vsyncadd [#allocation3], 4294967040 }
  0x25   :  { %251 = dma.done.wait [#allocation6], 256  }
  0x26   :  { %252 = vsyncadd [#allocation6], 4294967040  ;;  %vm54_vm0 = vcmask 130048   ;;  %v45_v0 = vld [vmem:[#allocation5] sm:$0xff]  ;;  %v46_v1 = vld [vmem:[#allocation5 + $0x8] sm:$0xff]  ;;  %s259_s1 = smov [#allocation7]  }
  0x27   :  { %v43_v2 = vld [vmem:[#allocation2] sm:$0xff]  ;;  %v174_v3 = vpack.c.bf16 %v46_v1, %v45_v0  ;;  %v44_v4 = vld [vmem:[#allocation2 + $0x8] sm:$0x3]  ;;  %s147_s12 = sshll.u32 %s259_s1, 4  ;;  %vm140_vm1 = vcmask 254976   ;;  %vm138_vm2 = vcmask 261120   ;;  %s148_s12 = int_to_ptr.vmem [resolvable:$true] %s147_s12 }
  0x28   :  { %171 = vmatprep.mubr.msk.f32.mxu0 %vm54_vm0, %v43_v2  ;;  %v160_v5 = vld [vmem:[%s330_s2] ss:$0 sm:$0xff]  ;;  %s227_s13 = scalar_lea.vmem %s148_s12, 256  ;;  %p232_p3 = scmp.lt.s32.totalorder %s148_s12, %s148_s12 }
  0x29   :  { %175 = vmatprep.subr.bf16.mxu0 %v174_v3  ;;  %p228_p2 = scmp.ne.s32.totalorder %s148_s12, %s227_s13  ;;  %p233_p4 = scmp.lt.s32.totalorder %s227_s13, %s227_s13 }
  0x2a   :  { %177 = vmatpush3.bf16.msra.mxu0 %v174_v3 }
  0x2b   :  { %p234_p5 = por %p233_p4, %p232_p3 }
  0x2d   :  { %172 = vmatmul.mubr.msk.f32.vlgmr.msra.gmra.mrb[0].mxu0 %vm54_vm0, %v44_v4  ;;  %p235_p6 = pnand %p234_p5, %p228_p2 }
 0x100   :  { %v173_v6 = vpop.f32.mrb[0].mxu0 }
 0x101   :  { %v133_v7 = vadd.f32 %v173_v6, %v160_v5  ;;  %v127_v8 = vpop.f32.mrb[1].mxu0 }
 0x102   :  { %v128_v9 = vadd.f32 %v160_v5, %v127_v8 }
 0x103   :  { %v137_v10 = vmax.f32 %v133_v7, 0.0 }
 0x104   :  { %v136_v11 = vmax.f32 %v128_v9, 0.0 }
 0x105   :  { %141 = vst.msk [vmem:[#allocation7 + $0x8] sm:$0x3] %vm140_vm1, %v137_v10 }
 0x106   :  { %139 = vst.msk [vmem:[#allocation7] sm:$0xff] %vm138_vm2, %v136_v11 }
 0x107   :  { %238 = shalt.err (!%p235_p6)
}
 0x108   :  { %s239_s15 = scalar_lea.hbm %s331_s3, 256 }
 0x109   :  { %p240_p7 = scmp.ne.s32.totalorder %s331_s3, %s239_s15  ;;  %p243_p8 = scmp.lt.u32.totalorder %s239_s15, %s331_s3 }
 0x10b   :  { %p245_p9 = pnand %p243_p8, %p240_p7 }
 0x10d   :  { %248 = shalt.err (!%p245_p9)
}
 0x10e   :  { %153 = dma.vmem_to_hbm [thread:$0]  %s148_s12, 256, %s331_s3, [#allocation4], %s256_s22, %s256_s22, %s257_s23  }
 0x10f   :  { %253 = dma.done.wait [#allocation4], 256  }
 0x110   :  { %254 = vsyncadd [#allocation4], 4294967040 }
 0x111   :  { %157 = vsyncpa [#allocation3], 1 }
 0x112   :  { %158 = vsyncpa [#allocation6], 1 }
 0x113   :  { %159 = vsyncpa [#allocation4], 1 }

</bundles_post_ra>
